<compile_context>
chip_gen: v5e
topology: v5e:2x2
jax: 0.10.0
libtpu: 0.0.40
codegen_flags: <defaults>
</compile_context>

<pallas_src>
import math
import functools

import jax
import jax.numpy as jnp
from jax.experimental import pallas as pl
from jax.experimental.pallas import tpu as pltpu


# ----------------------------- Pallas kernel ------------------------------ #
def hpool_kernel(ah_ref, a_ref, x_ref, w1_ref, w2_ref, out_ref,
                 *, batch, n, ns, fo):
    """One grid step processes the whole (tiny) batch.

    ah_ref / a_ref : (B*N, B*N) bf16, block-diagonal per batch
    x_ref          : (B*N, F_in) bf16, batch-flattened node features
    w1_ref         : (F_in, 2H)  bf16, = [Wf1 | Ws1]
    w2_ref         : (2H, Fo+Ns) bf16, = blockdiag(Wf2, Ws2)
    out_ref        : (B*Ns, Fo+Ns) f32, = [x_next | A_new] merged slab
    """
    bf16 = jnp.bfloat16
    dot = lambda u, v: jnp.dot(u, v, preferred_element_type=jnp.float32)

    ah = ah_ref[...]                                   # (B*N, B*N)
    a = a_ref[...]                                     # (B*N, B*N)
    x = x_ref[...]                                     # (B*N, F_in)
    w1 = w1_ref[...]                                   # (F_in, 2H)
    w2 = w2_ref[...]                                   # (2H, Fo+Ns)

    # ---- fused layer 1 of both GCN stacks, all batches at once ----
    #   h = ReLU( Ah_bd @ (X @ [Wf1|Ws1]) )            (B*N, 2H) f32
    xw1 = dot(x, w1)
    h = jnp.maximum(dot(ah, xw1.astype(bf16)), 0.0)

    # ---- fused layer 2:  z = Ah_bd @ (h @ blockdiag(Wf2,Ws2)) ----
    #   z = [xf_pre | logits]                          (B*N, Fo+Ns) f32
    hw2 = dot(h.astype(bf16), w2)
    z = dot(ah, hw2.astype(bf16))

    xf = jnp.maximum(z[:, :fo], 0.0)                   # (B*N, Fo)  f32
    logits = z[:, fo:]                                 # (B*N, Ns)  f32

    # ---- softmax over the assignment dim (all f32; exact division so the
    #      rows of s sum to 1) ----
    m = jnp.max(logits, axis=-1, keepdims=True)
    e = jnp.exp(logits - m)
    s = e / jnp.sum(e, axis=-1, keepdims=True)         # (B*N, Ns)  f32

    # ---- A @ s for every batch in one dot (A is block-diagonal) ----
    a_s = dot(a, s.astype(bf16))                       # (B*N, Ns)  f32

    # ---- fused pooling:  s^T @ [xf | A s] = [x_next | A_new] per batch ----
    rhs = jnp.concatenate([xf, a_s], axis=-1).astype(bf16)   # (B*N, Fo+Ns)
    for b in range(batch):                             # tiny static loop
        s_b = s[b * n:(b + 1) * n, :]                  # (N, Ns)
        st = s_b.T.astype(bf16)                        # (Ns, N)
        out_ref[b * ns:(b + 1) * ns, :] = dot(st, rhs[b * n:(b + 1) * n, :])


# ------------------------------- wrapper ----------------------------------- #
def _block_diag(batched):
    """(B, N, M) -> block-diagonal (B*N, B*M). Only for small B*N."""
    B, N, M = batched.shape
    out = jnp.zeros((B * N, B * M), batched.dtype)
    for b in range(B):
        out = out.at[b * N:(b + 1) * N, b * M:(b + 1) * M].set(batched[b])
    return out


def hpool_forward(x, A, Ah, ws1, ws2, wf1, wf2):
    B, N, F_in = x.shape
    H = ws1.shape[1]
    Ns = ws2.shape[1]
    Fo = wf2.shape[1]
    assert wf1.shape == (F_in, H) and ws2.shape == (H, Ns) and wf2.shape == (H, Fo)

    # Fuse the two parallel GCN stacks host-side:
    #   layer 1: W1 = [Wf1 | Ws1]           -> x @ W1 in one (F_in, 2H) matmul
    #   layer 2: W2 = blockdiag(Wf2, Ws2)   -> h @ W2 yields [xf_pre | logits]
    w1 = jnp.concatenate([wf1, ws1], axis=1)                          # (F_in, 2H)
    w2 = jnp.zeros((2 * H, Fo + Ns), jnp.float32)
    w2 = w2.at[:H, :Fo].set(wf2).at[H:, Fo:].set(ws2)                 # (2H, Fo+Ns)

    bf16 = jnp.bfloat16
    # Small-problem fast path: flatten the batch into the node dimension and
    # pass block-diagonal adjacencies so every matmul covers all batches.
    ah_bd = _block_diag(Ah).astype(bf16)                              # (B*N, B*N)
    a_bd = _block_diag(A).astype(bf16)                                # (B*N, B*N)
    x_flat = x.reshape(B * N, F_in).astype(bf16)                      # (B*N, F_in)
    w1_b, w2_b = w1.astype(bf16), w2.astype(bf16)

    kernel = functools.partial(hpool_kernel, batch=B, n=N, ns=Ns, fo=Fo)
    spec2d = lambda shape: pl.BlockSpec(shape, lambda i: (0, 0))

    out = pl.pallas_call(
        kernel,
        out_shape=jax.ShapeDtypeStruct((B * Ns, Fo + Ns), jnp.float32),
        grid=(1,),
        in_specs=[
            spec2d((B * N, B * N)),          # Ah (block-diag)
            spec2d((B * N, B * N)),          # A  (block-diag)
            spec2d((B * N, F_in)),           # x  (flattened)
            spec2d((F_in, 2 * H)),           # [Wf1 | Ws1]
            spec2d((2 * H, Fo + Ns)),        # blockdiag(Wf2, Ws2)
        ],
        out_specs=spec2d((B * Ns, Fo + Ns)),  # [x_next | A_new] merged slab
        compiler_params=pltpu.CompilerParams(
            dimension_semantics=("arbitrary",)),
    )(ah_bd, a_bd, x_flat, w1_b, w2_b)

    x_next = out[:, :Fo].reshape(B, Ns, Fo)
    A_new = out[:, Fo:].reshape(B, Ns, Ns)
    return x_next, A_new


# --------------------------- plain-JAX reference --------------------------- #
def _gcn_layer_ref(x, Ah, W, act):
    return act(jnp.einsum("bij,bjf->bif", Ah, jnp.einsum("bnf,fo->bno", x, W)))


def hpool_ref(x, A, Ah, ws1, ws2, wf1, wf2):
    relu = lambda v: jnp.maximum(v, 0.0)
    softmax = lambda v: jax.nn.softmax(v, axis=-1)
    h_s = _gcn_layer_ref(x, Ah, ws1, relu)
    s = _gcn_layer_ref(h_s, Ah, ws2, softmax)
    h_f = _gcn_layer_ref(x, Ah, wf1, relu)
    xf = _gcn_layer_ref(h_f, Ah, wf2, relu)
    st = jnp.swapaxes(s, 1, 2)
    x_next = jnp.einsum("bsn,bnf->bsf", st, xf)
    A_new = jnp.einsum("bsn,bnm->bsm", st, jnp.einsum("bnm,bms->bns", A, s))
    return x_next, A_new


def norm_adj(A):
    """Equivalent of `norm()` in the PyTorch code (glue, plain JAX)."""
    B, N, _ = A.shape
    A_post = A + jnp.eye(N, dtype=A.dtype)[None]
    deg = jnp.sum(jnp.abs(A_post), axis=-1)
    d_inv_sqrt = deg ** -0.5
    D = jax.vmap(jnp.diag)(d_inv_sqrt)
    return D @ A_post @ D


# ---------------------------------- main ----------------------------------- #
if __name__ == "__main__":
    key = jax.random.PRNGKey(0)
    B, N = 2, 16
    F_in, H, Ns, Fo = 32, 16, 8, 32     # pool_nodes=[32,16,8], x_feats=[32,16,32]

    k_x, k_a, k_ws1, k_ws2, k_wf1, k_wf2 = jax.random.split(key, 6)

    x = jax.random.normal(k_x, (B, N, F_in), dtype=jnp.float32)

    # symmetric {0,1} adjacency; self-loops handled by norm()
    A_raw = (jax.random.uniform(k_a, (B, N, N)) > 0.7).astype(jnp.float32)
    A = jnp.clip(A_raw + jnp.swapaxes(A_raw, 1, 2), 0.0, 1.0)
    Ah = norm_adj(A)

    # deterministic weight init, mirroring torch uniform_(-1/sqrt(out), 1/sqrt(out))
    def init_w(k, in_dim, out_dim):
        stdv = 1.0 / math.sqrt(out_dim)
        return jax.random.uniform(k, (in_dim, out_dim), dtype=jnp.float32,
                                  minval=-stdv, maxval=stdv)

    ws1 = init_w(k_ws1, F_in, H)
    ws2 = init_w(k_ws2, H, Ns)
    wf1 = init_w(k_wf1, F_in, H)
    wf2 = init_w(k_wf2, H, Fo)

    x_next, A_new = jax.block_until_ready(
        hpool_forward(x, A, Ah, ws1, ws2, wf1, wf2))

    x_next_ref, A_new_ref = hpool_ref(x, A, Ah, ws1, ws2, wf1, wf2)

    assert x_next.shape == (B, Ns, Fo) and A_new.shape == (B, Ns, Ns)
    # Tolerance reflects bf16 MXU operands (f32 accumulation) vs. the f32 reference.
    assert jnp.allclose(x_next, x_next_ref, atol=2e-2, rtol=2e-2)
    assert jnp.allclose(A_new, A_new_ref, atol=2e-2, rtol=2e-2)

    print("KERNEL_OK")
</pallas_src>

<mosaic_0001>
module attributes {stable_mosaic.version = 11 : i64} {
  func.func @hpool_kernel(%arg0: i32, %arg1: memref<32x32xbf16, #tpu.memory_space<vmem>>, %arg2: memref<32x32xbf16, #tpu.memory_space<vmem>>, %arg3: memref<32x32xbf16, #tpu.memory_space<vmem>>, %arg4: memref<32x32xbf16, #tpu.memory_space<vmem>>, %arg5: memref<32x40xbf16, #tpu.memory_space<vmem>>, %arg6: memref<16x40xf32, #tpu.memory_space<vmem>>) attributes {dimension_semantics = [#tpu.dimension_semantics<arbitrary>], iteration_bounds = array<i64: 1>, scalar_prefetch = 0 : i64, scratch_operands = 0 : i64, tpu.core_type = #tpu.core_type<tc>, window_params = [{pipeline_mode = #tpu.pipeline_mode<synchronous>, transform_indices = @transform_0, window_bounds = array<i64: 32, 32>}, {pipeline_mode = #tpu.pipeline_mode<synchronous>, transform_indices = @transform_1, window_bounds = array<i64: 32, 32>}, {pipeline_mode = #tpu.pipeline_mode<synchronous>, transform_indices = @transform_2, window_bounds = array<i64: 32, 32>}, {pipeline_mode = #tpu.pipeline_mode<synchronous>, transform_indices = @transform_3, window_bounds = array<i64: 32, 32>}, {pipeline_mode = #tpu.pipeline_mode<synchronous>, transform_indices = @transform_4, window_bounds = array<i64: 32, 40>}, {pipeline_mode = #tpu.pipeline_mode<synchronous>, transform_indices = @transform_5, window_bounds = array<i64: 16, 40>}]} {
    %c0 = arith.constant 0 : index
    %c0_0 = arith.constant 0 : index
    %0 = vector.load %arg1[%c0, %c0_0] : memref<32x32xbf16, #tpu.memory_space<vmem>>, vector<32x32xbf16>
    %c0_1 = arith.constant 0 : index
    %c0_2 = arith.constant 0 : index
    %1 = vector.load %arg2[%c0_1, %c0_2] : memref<32x32xbf16, #tpu.memory_space<vmem>>, vector<32x32xbf16>
    %c0_3 = arith.constant 0 : index
    %c0_4 = arith.constant 0 : index
    %2 = vector.load %arg3[%c0_3, %c0_4] : memref<32x32xbf16, #tpu.memory_space<vmem>>, vector<32x32xbf16>
    %c0_5 = arith.constant 0 : index
    %c0_6 = arith.constant 0 : index
    %3 = vector.load %arg4[%c0_5, %c0_6] : memref<32x32xbf16, #tpu.memory_space<vmem>>, vector<32x32xbf16>
    %c0_7 = arith.constant 0 : index
    %c0_8 = arith.constant 0 : index
    %4 = vector.load %arg5[%c0_7, %c0_8] : memref<32x40xbf16, #tpu.memory_space<vmem>>, vector<32x40xbf16>
    %cst = arith.constant dense<0.000000e+00> : vector<32x32xf32>
    %5 = tpu.matmul %2, %3, %cst {dimension_numbers = #tpu.dot_dimension_numbers<[1], [0], [0], [1], [0, 0, 1, 1], [], []>} : vector<32x32xbf16>, vector<32x32xbf16>, vector<32x32xf32> -> vector<32x32xf32>
    %6 = arith.truncf %5 : vector<32x32xf32> to vector<32x32xbf16>
    %cst_9 = arith.constant dense<0.000000e+00> : vector<32x32xf32>
    %7 = tpu.matmul %0, %6, %cst_9 {dimension_numbers = #tpu.dot_dimension_numbers<[1], [0], [0], [1], [0, 0, 1, 1], [], []>} : vector<32x32xbf16>, vector<32x32xbf16>, vector<32x32xf32> -> vector<32x32xf32>
    %cst_10 = arith.constant 0.000000e+00 : f32
    %8 = vector.broadcast %cst_10 : f32 to vector<32x32xf32>
    %9 = arith.maximumf %7, %8 : vector<32x32xf32>
    %10 = arith.truncf %9 : vector<32x32xf32> to vector<32x32xbf16>
    %cst_11 = arith.constant dense<0.000000e+00> : vector<32x40xf32>
    %11 = tpu.matmul %10, %4, %cst_11 {dimension_numbers = #tpu.dot_dimension_numbers<[1], [0], [0], [1], [0, 0, 1, 1], [], []>} : vector<32x32xbf16>, vector<32x40xbf16>, vector<32x40xf32> -> vector<32x40xf32>
    %12 = arith.truncf %11 : vector<32x40xf32> to vector<32x40xbf16>
    %cst_12 = arith.constant dense<0.000000e+00> : vector<32x40xf32>
    %13 = tpu.matmul %0, %12, %cst_12 {dimension_numbers = #tpu.dot_dimension_numbers<[1], [0], [0], [1], [0, 0, 1, 1], [], []>} : vector<32x32xbf16>, vector<32x40xbf16>, vector<32x40xf32> -> vector<32x40xf32>
    %14 = vector.extract_strided_slice %13 {offsets = [0, 0], sizes = [32, 32], strides = [1, 1]} : vector<32x40xf32> to vector<32x32xf32>
    %cst_13 = arith.constant 0.000000e+00 : f32
    %15 = vector.broadcast %cst_13 : f32 to vector<32x32xf32>
    %16 = arith.maximumf %14, %15 : vector<32x32xf32>
    %17 = vector.extract_strided_slice %13 {offsets = [0, 32], sizes = [32, 8], strides = [1, 1]} : vector<32x40xf32> to vector<32x8xf32>
    %cst_14 = arith.constant dense<0xFF800000> : vector<32xf32>
    %18 = vector.multi_reduction <maximumf>, %17, %cst_14 [1] : vector<32x8xf32> to vector<32xf32>
    %19 = vector.shape_cast %18 : vector<32xf32> to vector<32x1xf32>
    %20 = vector.broadcast %19 : vector<32x1xf32> to vector<32x8xf32>
    %21 = arith.subf %17, %20 : vector<32x8xf32>
    %22 = math.exp %21 : vector<32x8xf32>
    %cst_15 = arith.constant dense<0.000000e+00> : vector<32xf32>
    %23 = vector.multi_reduction <add>, %22, %cst_15 [1] : vector<32x8xf32> to vector<32xf32>
    %24 = vector.shape_cast %23 : vector<32xf32> to vector<32x1xf32>
    %25 = vector.broadcast %24 : vector<32x1xf32> to vector<32x8xf32>
    %26 = arith.divf %22, %25 : vector<32x8xf32>
    %27 = arith.truncf %26 : vector<32x8xf32> to vector<32x8xbf16>
    %cst_16 = arith.constant dense<0.000000e+00> : vector<32x8xf32>
    %28 = tpu.matmul %1, %27, %cst_16 {dimension_numbers = #tpu.dot_dimension_numbers<[1], [0], [0], [1], [0, 0, 1, 1], [], []>} : vector<32x32xbf16>, vector<32x8xbf16>, vector<32x8xf32> -> vector<32x8xf32>
    %29 = tpu.concatenate %16, %28 in 1 : vector<32x32xf32>, vector<32x8xf32> -> vector<32x40xf32>
    %30 = arith.truncf %29 : vector<32x40xf32> to vector<32x40xbf16>
    %31 = vector.extract_strided_slice %26 {offsets = [0, 0], sizes = [16, 8], strides = [1, 1]} : vector<32x8xf32> to vector<16x8xf32>
    %32 = tpu.transpose %31, [1, 0] : vector<16x8xf32> -> vector<8x16xf32>
    %33 = arith.truncf %32 : vector<8x16xf32> to vector<8x16xbf16>
    %34 = vector.extract_strided_slice %30 {offsets = [0, 0], sizes = [16, 40], strides = [1, 1]} : vector<32x40xbf16> to vector<16x40xbf16>
    %cst_17 = arith.constant dense<0.000000e+00> : vector<8x40xf32>
    %35 = tpu.matmul %33, %34, %cst_17 {dimension_numbers = #tpu.dot_dimension_numbers<[1], [0], [0], [1], [0, 0, 1, 1], [], []>} : vector<8x16xbf16>, vector<16x40xbf16>, vector<8x40xf32> -> vector<8x40xf32>
    %c0_18 = arith.constant 0 : index
    %c0_19 = arith.constant 0 : index
    %36 = vector.load %arg6[%c0_18, %c0_19] : memref<16x40xf32, #tpu.memory_space<vmem>>, vector<8x40xf32>
    tpu.vector_store %arg6[%c0_18, %c0_19], %35 {strides = array<i32>} : memref<16x40xf32, #tpu.memory_space<vmem>>, vector<8x40xf32>,
    %37 = vector.extract_strided_slice %26 {offsets = [16, 0], sizes = [16, 8], strides = [1, 1]} : vector<32x8xf32> to vector<16x8xf32>
    %38 = tpu.transpose %37, [1, 0] : vector<16x8xf32> -> vector<8x16xf32>
    %39 = arith.truncf %38 : vector<8x16xf32> to vector<8x16xbf16>
    %40 = vector.extract_strided_slice %30 {offsets = [16, 0], sizes = [16, 40], strides = [1, 1]} : vector<32x40xbf16> to vector<16x40xbf16>
    %cst_20 = arith.constant dense<0.000000e+00> : vector<8x40xf32>
    %41 = tpu.matmul %39, %40, %cst_20 {dimension_numbers = #tpu.dot_dimension_numbers<[1], [0], [0], [1], [0, 0, 1, 1], [], []>} : vector<8x16xbf16>, vector<16x40xbf16>, vector<8x40xf32> -> vector<8x40xf32>
    %c8 = arith.constant 8 : index
    %c0_21 = arith.constant 0 : index
    %42 = vector.load %arg6[%c8, %c0_21] : memref<16x40xf32, #tpu.memory_space<vmem>>, vector<8x40xf32>
    tpu.vector_store %arg6[%c8, %c0_21], %41 {strides = array<i32>} : memref<16x40xf32, #tpu.memory_space<vmem>>, vector<8x40xf32>,
    return
  }
  func.func @transform_0(%arg0: i32) -> (i32, i32) {
    %c0_i32 = arith.constant 0 : i32
    %c0_i32_0 = arith.constant 0 : i32
    %c0_i32_1 = arith.constant 0 : i32
    return %c0_i32, %c0_i32_0 : i32, i32
  }
  func.func @transform_1(%arg0: i32) -> (i32, i32) {
    %c0_i32 = arith.constant 0 : i32
    %c0_i32_0 = arith.constant 0 : i32
    %c0_i32_1 = arith.constant 0 : i32
    return %c0_i32, %c0_i32_0 : i32, i32
  }
  func.func @transform_2(%arg0: i32) -> (i32, i32) {
    %c0_i32 = arith.constant 0 : i32
    %c0_i32_0 = arith.constant 0 : i32
    %c0_i32_1 = arith.constant 0 : i32
    return %c0_i32, %c0_i32_0 : i32, i32
  }
  func.func @transform_3(%arg0: i32) -> (i32, i32) {
    %c0_i32 = arith.constant 0 : i32
    %c0_i32_0 = arith.constant 0 : i32
    %c0_i32_1 = arith.constant 0 : i32
    return %c0_i32, %c0_i32_0 : i32, i32
  }
  func.func @transform_4(%arg0: i32) -> (i32, i32) {
    %c0_i32 = arith.constant 0 : i32
    %c0_i32_0 = arith.constant 0 : i32
    %c0_i32_1 = arith.constant 0 : i32
    return %c0_i32, %c0_i32_0 : i32, i32
  }
  func.func @transform_5(%arg0: i32) -> (i32, i32) {
    %c0_i32 = arith.constant 0 : i32
    %c0_i32_0 = arith.constant 0 : i32
    %c0_i32_1 = arith.constant 0 : i32
    return %c0_i32, %c0_i32_0 : i32, i32
  }
}

</mosaic_0001>

<bundles_post_ra>
// kernel: tpu_custom_call.1
= control target key start
LH: loop header
LB: loop body
LE: loop exit
PB: predicated region body
PF: predicated region fallthrough
CT: control target
= control target key end

     0   :  { %10 = vsyncpa [#allocation3], 0  ;;  %s1002_s0 = inlined_call_operand.hbm [shape: bf16[32,32], index: 0, kind: input, shape index: {}]   ;;  %s1003_s1 = inlined_call_operand.hbm [shape: bf16[32,32], index: 1, kind: input, shape index: {}]   ;;  %s1004_s2 = inlined_call_operand.hbm [shape: bf16[32,32], index: 2, kind: input, shape index: {}]   ;;  %s1005_s3 = inlined_call_operand.hbm [shape: bf16[32,32], index: 3, kind: input, shape index: {}]   ;;  %s1006_s4 = inlined_call_operand.hbm [shape: bf16[32,40], index: 4, kind: input, shape index: {}]   ;;  %s1007_s5 = inlined_call_operand.hbm [shape: f32[16,40], index: 5, kind: output, shape index: {}]  }
   0x1   :  { %11 = vsyncpa [#allocation6], 0 }
   0x2   :  { %12 = vsyncpa [#allocation9], 0 }
   0x3   :  { %13 = vsyncpa [#allocation4], 0  ;;  %s31_s20 = sshll.u32 %s1003_s1, 4  ;;  %s872_s21 = smov [#allocation5]   ;;  %s32_s20 = int_to_ptr.hbm [resolvable:$true] %s31_s20 }
   0x4   :  { %s33_s22 = sshll.u32 %s872_s21, 4  ;;  %s57_s25 = sshll.u32 %s1005_s3, 4  ;;  %s34_s22 = int_to_ptr.vmem [resolvable:$true] %s33_s22  ;;  %s58_s25 = int_to_ptr.hbm [resolvable:$true] %s57_s25 }
   0x5   :  { %s873_s26 = smov 64   ;;  %s874_s27 = smov 4  }
   0x6   :  { %39 = dma.hbm_to_vmem [thread:$0]  %s32_s20, 256, %s34_s22, [#allocation6], %s873_s26, %s873_s26, %s874_s27  }
   0x7   :  { %s875_s28 = smov [#allocation8]   ;;  %s18_s7 = sshll.u32 %s1002_s0, 4  ;;  %s19_s7 = int_to_ptr.hbm [resolvable:$true] %s18_s7 }
   0x8   :  { %s59_s29 = sshll.u32 %s875_s28, 4  ;;  %s44_s9 = sshll.u32 %s1004_s2, 4  ;;  %s60_s29 = int_to_ptr.vmem [resolvable:$true] %s59_s29  ;;  %s45_s9 = int_to_ptr.hbm [resolvable:$true] %s44_s9 }
   0x9   :  { %65 = dma.hbm_to_vmem [thread:$0]  %s58_s25, 256, %s60_s29, [#allocation9], %s873_s26, %s873_s26, %s874_s27  }
   0xa   :  { %s876_s10 = smov [#allocation2]   ;;  %s877_s3 = smov [#allocation7]  }
   0xb   :  { %s20_s11 = sshll.u32 %s876_s10, 4  ;;  %s46_s12 = sshll.u32 %s877_s3, 4  ;;  %s21_s11 = int_to_ptr.vmem [resolvable:$true] %s20_s11  ;;  %s47_s12 = int_to_ptr.vmem [resolvable:$true] %s46_s12 }
   0xc   :  { %26 = dma.hbm_to_vmem [thread:$0]  %s19_s7, 256, %s21_s11, [#allocation3], %s873_s26, %s873_s26, %s874_s27  }
   0xd   :  { %s70_s15 = sshll.u32 %s1006_s4, 4  ;;  %s878_s0 = smov [#allocation10]   ;;  %s71_s15 = int_to_ptr.hbm [resolvable:$true] %s70_s15 }
   0xe   :  { %52 = dma.hbm_to_vmem [thread:$0]  %s45_s9, 256, %s47_s12, [#allocation6], %s873_s26, %s873_s26, %s874_s27  }
   0xf   :  { %s72_s16 = sshll.u32 %s878_s0, 4  ;;  %s73_s16 = int_to_ptr.vmem [resolvable:$true] %s72_s16 }
  0x10   :  { %78 = dma.hbm_to_vmem [thread:$0]  %s71_s15, 256, %s73_s16, [#allocation9], %s873_s26, %s873_s26, %s874_s27  }
  0x11   :  { %864 = dma.done.wait [#allocation3], 256  }
  0x12   :  { %865 = vsyncadd [#allocation3], 4294967040 }
  0x13   :  { %866 = dma.done.wait [#allocation6], 512  }
  0x14   :  { %867 = vsyncadd [#allocation6], 4294966784 }
  0x15   :  { %868 = dma.done.wait [#allocation9], 512  }
  0x16   :  { %869 = vsyncadd [#allocation9], 4294966784  ;;  %v666_v0 = vld [vmem:[#allocation8 + $0x8] sm:$0xff]  ;;  %v665_v1 = vld [vmem:[#allocation8] sm:$0xff]  ;;  %vm142_vm0 = vcmask 261120   ;;  %vm273_vm1 = vcmask 326912  }
  0x17   :  { %669 = vmatpush.bf16.msra.mxu3 %v666_v0  ;;  %155 = vmatpush.bf16.msra.mxu0 %v666_v0  ;;  %v664_v2 = vld [vmem:[#allocation7 + $0x8] sm:$0xff]  ;;  %v663_v3 = vld [vmem:[#allocation7] sm:$0xff]  ;;  %s879_s2 = smov 96   ;;  %vm314_vm2 = vcmask 64512   ;;  %s880_s4 = smov 32  }
  0x18   :  { %v659_v10 = vld [vmem:[#allocation2] sm:$0xff]  ;;  %v660_v11 = vld [vmem:[#allocation2 + $0x8] sm:$0xff]  ;;  %s881_s17 = smov [#allocation11]   ;;  %s592_s21 = sshll.u32 %s1007_s5, 4  ;;  %s593_s21 = int_to_ptr.hbm [resolvable:$true] %s592_s21 }
  0x19   :  { %v668_v12 = vld [vmem:[#allocation10 + $0x8] sm:$0xff]  ;;  %v667_v13 = vld [vmem:[#allocation10] sm:$0xff]  ;;  %s590_s18 = sshll.u32 %s881_s17, 4  ;;  %s882_s22 = smov 128   ;;  %s591_s18 = int_to_ptr.vmem [resolvable:$true] %s590_s18 }
  0x1a   :  { %235 = vmatpush.bf16.msra.mxu2 %v668_v12  ;;  %s883_s23 = smov 8  }
  0x1b   :  { %670 = vmatpush.bf16.msra.mxu3 %v665_v1  ;;  %156 = vmatpush.bf16.msra.mxu0 %v665_v1 }
  0x1e   :  { %624 = vmatmul.msk.bf16.vlgmr.msra.gmra.mxu3 %vm142_vm0, %v664_v2  ;;  %623 = vmatmul.msk.bf16.vlgmr.msra.gmra.mxu0 %vm142_vm0, %v663_v3 }
  0x1f   :  { %236 = vmatpush.bf16.msra.mxu2 %v667_v13 }
  0x9b   :  { %v158_v4 = vpop.f32.mrf.mxu0 }
  0xa1   :  { %v163_v5 = vpop.f32.mrf.mxu3 }
  0xa3   :  { %v160_v8 = vpop.f32.mrf.mxu0 }
  0xa4   :  { %v168_v9 = vpack.c.bf16 %v160_v8, %v158_v4 }
  0xa9   :  { %v165_v6 = vpop.f32.mrf.mxu3 }
  0xaa   :  { %v169_v7 = vpack.c.bf16 %v165_v6, %v163_v5 }
  0xac   :  { %192 = vmatpush.bf16.msra.mxu1 %v169_v7 }
  0xb0   :  { %193 = vmatpush.bf16.msra.mxu1 %v168_v9 }
  0xb3   :  { %633 = vmatmul.msk.bf16.vlgmr.msra.gmra.mxu1 %vm142_vm0, %v659_v10 }
  0xc3   :  { %634 = vmatmul.msk.bf16.gmra.mxu1 %vm142_vm0, %v660_v11 }
 0x130   :  { %v195_v14 = vpop.f32.mrf.mxu1 }
 0x131   :  { %v205_v16 = vmax.f32 %v195_v14, 0.0 }
 0x138   :  { %v197_v15 = vpop.f32.mrf.mxu1 }
 0x139   :  { %v206_v17 = vmax.f32 %v197_v15, 0.0 }
 0x13b   :  { %v209_v18 = vpack.c.bf16 %v206_v17, %v205_v16 }
 0x13d   :  { %643 = vmatmul.msk.bf16.vlgmr.msra.gmra.mxu2 %vm142_vm0, %v209_v18 }
 0x140   :  { %v200_v19 = vpop.f32.mrf.mxu1 }
 0x141   :  { %v207_v21 = vmax.f32 %v200_v19, 0.0 }
 0x148   :  { %v202_v20 = vpop.f32.mrf.mxu1 }
 0x149   :  { %v208_v22 = vmax.f32 %v202_v20, 0.0 }
 0x14b   :  { %v210_v23 = vpack.c.bf16 %v208_v22, %v207_v21 }
 0x14d   :  { %644 = vmatmul.msk.bf16.gmra.mxu2 %vm142_vm0, %v210_v23 }
 0x1c0   :  { %v238_v24 = vpop.f32.mrf.mxu2 }
 0x1c8   :  { %v240_v25 = vpop.f32.mrf.mxu2 }
 0x1c9   :  { %v248_v29 = vpack.c.bf16 %v240_v25, %v238_v24 }
 0x1d0   :  { %v243_v26 = vpop.f32.mrf.mxu2 }
 0x1d8   :  { %v245_v27 = vpop.f32.mrf.mxu2 }
 0x1d9   :  { %v249_v28 = vpack.c.bf16 %v245_v27, %v243_v26 }
 0x1db   :  { %256 = vmatpush.bf16.msrb.mxu3 %v249_v28 }
 0x1df   :  { %257 = vmatpush.bf16.msrb.mxu3 %v248_v29 }
 0x1e2   :  { %645 = vmatmul.msk.bf16.vlgmr.msrb.gmra.mxu3 %vm142_vm0, %v659_v10 }
 0x1f2   :  { %646 = vmatmul.msk.bf16.gmra.mxu3 %vm142_vm0, %v660_v11 }
 0x265   :  { %v937_v30 = vpop.f32.mrf.mxu3 }
 0x266   :  { %v274_v31 = vsel %vm273_vm1, %v937_v30, -inf }
 0x267   :  { %275 = vmax.xlane.f32.xlu1 %v274_v31 }
 0x26d   :  { %v940_v32 = vpop.f32.mrf.mxu3 }
 0x26e   :  { %v277_v33 = vsel %vm273_vm1, %v940_v32, -inf }
 0x26f   :  { %278 = vmax.xlane.f32.xlu1 %v277_v33 }
 0x275   :  { %v943_v34 = vpop.f32.mrf.mxu3 }
 0x276   :  { %v280_v35 = vsel %vm273_vm1, %v943_v34, -inf }
 0x277   :  { %281 = vmax.xlane.f32.xlu0 %v280_v35 }
 0x27d   :  { %v946_v36 = vpop.f32.mrf.mxu3 }
 0x27e   :  { %v283_v37 = vsel %vm273_vm1, %v946_v36, -inf }
 0x27f   :  { %284 = vmax.xlane.f32.xlu0 %v283_v37 }
 0x2da   :  { %v276_v38 = vpop.xlane.xlu1 %275 }
 0x2db   :  { %v286_v39 = vsub.f32 %v937_v30, %v276_v38 }
 0x2dd   :  { %v290_v40 = vmul.f32 1.442695, %v286_v39 }
 0x2df   :  { %704 = vpow2.f32 %v290_v40 }
 0x2e2   :  { %v279_v41 = vpop.xlane.xlu1 %278 }
 0x2e3   :  { %v287_v42 = vsub.f32 %v940_v32, %v279_v41 }
 0x2e5   :  { %v951_v43 = vpop.eup %704  ;;  %v292_v44 = vmul.f32 1.442695, %v287_v42 }
 0x2e6   :  { %302 = vrot.lane.b32.xlu0 %v951_v43, %s879_s2 }
 0x2e7   :  { %706 = vpow2.f32 %v292_v44 }
 0x2ea   :  { %v282_v45 = vpop.xlane.xlu0 %281 }
 0x2eb   :  { %v288_v46 = vsub.f32 %v943_v34, %v282_v45 }
 0x2ed   :  { %v956_v47 = vpop.eup %706  ;;  %v294_v48 = vmul.f32 1.442695, %v288_v46 }
 0x2ee   :  { %304 = vrot.lane.b32.xlu1 %v956_v47, %s879_s2 }
 0x2ef   :  { %708 = vpow2.f32 %v294_v48 }
 0x2f2   :  { %v285_v49 = vpop.xlane.xlu0 %284 }
 0x2f3   :  { %v289_v50 = vsub.f32 %v946_v36, %v285_v49 }
 0x2f5   :  { %v961_v51 = vpop.eup %708  ;;  %v296_v52 = vmul.f32 1.442695, %v289_v50 }
 0x2f6   :  { %306 = vrot.lane.b32.xlu2 %v961_v51, %s879_s2 }
 0x2f7   :  { %710 = vpow2.f32 %v296_v52 }
 0x2fd   :  { %v965_v53 = vpop.eup %710 }
 0x2fe   :  { %308 = vrot.lane.b32.xlu2 %v965_v53, %s879_s2 }
 0x350   :  { %v307_v54 = vpop.permute.xlu2 %306 }
 0x351   :  { %v321_v55 = vsel %vm314_vm2, %v307_v54, 0.0 }
 0x352   :  { %322 = vadd.xlane.f32.xlu2 %v321_v55 }
 0x358   :  { %v309_v56 = vpop.permute.xlu2 %308  ;;  %v303_v57 = vpop.permute.xlu0 %302 }
 0x359   :  { %v324_v58 = vsel %vm314_vm2, %v309_v56, 0.0  ;;  %v315_v59 = vsel %vm314_vm2, %v303_v57, 0.0 }
 0x35a   :  { %325 = vadd.xlane.f32.xlu0 %v324_v58  ;;  %316 = vadd.xlane.f32.xlu1 %v315_v59 }
 0x360   :  { %v305_v60 = vpop.permute.xlu1 %304 }
 0x361   :  { %v318_v61 = vsel %vm314_vm2, %v305_v60, 0.0  ;;  %v661_v60 = vld [vmem:[#allocation5] sm:$0xff] }
 0x362   :  { %319 = vadd.xlane.f32.xlu2 %v318_v61  ;;  %v662_v61 = vld [vmem:[#allocation5 + $0x8] sm:$0xff] }
 0x3c5   :  { %v323_v62 = vpop.xlane.xlu2 %322 }
 0x3c6   :  { %712 = vrcp.f32 %v323_v62  ;;  %v368_v11 = vand.u32 2147483648, %v323_v62  ;;  %vm362_vm4 = vweird.f32 %v323_v62  ;;  %v366_v13 = vand.u32 2147483647, %v323_v62 }
 0x3c8   :  { %v369_v21 = vor.u32 1.1754944e-38, %v368_v11  ;;  %vm367_vm7 = vcmp.eq.f32.partialorder %v366_v13, 8.507059e+37 }
 0x3cc   :  { %v713_v63 = vpop.eup %712 }
 0x3cd   :  { %v358_v0 = vmul.f32 %v713_v63, %v323_v62  ;;  %v317_v1 = vpop.xlane.xlu1 %316  ;;  %v326_v2 = vpop.xlane.xlu0 %325  ;;  %vm363_vm3 = vweird.f32 %v713_v63 }
 0x3ce   :  { %714 = vrcp.f32 %v317_v1  ;;  %v383_v15 = vand.u32 2147483648, %v326_v2  ;;  %vm969_vm5 = vmor %vm362_vm4, %vm363_vm3  ;;  %v381_v19 = vand.u32 2147483647, %v326_v2  ;;  %vm377_vm8 = vweird.f32 %v326_v2 }
 0x3cf   :  { %v359_v3 = vsub.f32 1.0, %v358_v0  ;;  %716 = vrcp.f32 %v326_v2  ;;  %v338_v28 = vand.u32 2147483648, %v317_v1  ;;  %vm332_vm12 = vweird.f32 %v317_v1 }
 0x3d0   :  { %v384_v24 = vor.u32 1.1754944e-38, %v383_v15  ;;  %vm382_vm11 = vcmp.eq.f32.partialorder %v381_v19, 8.507059e+37  ;;  %v336_v31 = vand.u32 2147483647, %v317_v1  ;;  %vm503_vm4 = vcmask 130048  }
 0x3d1   :  { %v360_v4 = vmul.f32 %v713_v63, %v359_v3  ;;  %v339_v45 = vor.u32 1.1754944e-38, %v338_v28 }
 0x3d2   :  { %vm337_vm15 = vcmp.eq.f32.partialorder %v336_v31, 8.507059e+37 }
 0x3d3   :  { %v361_v9 = vadd.f32 %v713_v63, %v360_v4 }
 0x3d4   :  { %v715_v5 = vpop.eup %714 }
 0x3d5   :  { %v717_v6 = vpop.eup %716  ;;  %v328_v7 = vmul.f32 %v715_v5, %v317_v1  ;;  %v320_v8 = vpop.xlane.xlu2 %319  ;;  %v365_v20 = vsel %vm969_vm5, %v713_v63, %v361_v9  ;;  %vm333_vm9 = vweird.f32 %v715_v5  ;;  %v271_v9 = vmax.f32 %v943_v34, 0.0 }
 0x3d6   :  { %v373_v10 = vmul.f32 %v717_v6, %v326_v2  ;;  %718 = vrcp.f32 %v320_v8  ;;  %vm378_vm6 = vweird.f32 %v717_v6  ;;  %v370_v27 = vsel %vm367_vm7, %v369_v21, %v365_v20  ;;  %vm975_vm13 = vmor %vm332_vm12, %vm333_vm9 }
 0x3d7   :  { %v329_v12 = vsub.f32 1.0, %v328_v7  ;;  %vm379_vm10 = vmor %vm377_vm8, %vm378_vm6  ;;  %v353_v38 = vand.u32 2147483648, %v320_v8  ;;  %v371_v39 = vmul.f32 %v961_v51, %v370_v27  ;;  %v351_v42 = vand.u32 2147483647, %v320_v8 }
 0x3d8   :  { %v374_v14 = vsub.f32 1.0, %v373_v10  ;;  %vm347_vm1 = vweird.f32 %v320_v8  ;;  %v272_v10 = vmax.f32 %v946_v36, 0.0  ;;  %v269_v21 = vmax.f32 %v937_v30, 0.0 }
 0x3d9   :  { %v330_v17 = vmul.f32 %v715_v5, %v329_v12  ;;  %v354_v50 = vor.u32 1.1754944e-38, %v353_v38  ;;  %vm352_vm3 = vcmp.eq.f32.partialorder %v351_v42, 8.507059e+37  ;;  %vm520_vm5 = vcmask 326656  }
 0x3da   :  { %v375_v18 = vmul.f32 %v717_v6, %v374_v14 }
 0x3db   :  { %v331_v25 = vadd.f32 %v715_v5, %v330_v17 }
 0x3dc   :  { %v719_v22 = vpop.eup %718  ;;  %v376_v23 = vadd.f32 %v717_v6, %v375_v18 }
 0x3dd   :  { %v343_v26 = vmul.f32 %v719_v22, %v320_v8  ;;  %vm348_vm14 = vweird.f32 %v719_v22  ;;  %v335_v44 = vsel %vm975_vm13, %v715_v5, %v331_v25 }
 0x3de   :  { %v380_v29 = vsel %vm379_vm10, %v717_v6, %v376_v23  ;;  %vm349_vm2 = vmor %vm347_vm1, %vm348_vm14  ;;  %v340_v51 = vsel %vm337_vm15, %v339_v45, %v335_v44 }
 0x3df   :  { %v344_v33 = vsub.f32 1.0, %v343_v26  ;;  %v385_v35 = vsel %vm382_vm11, %v384_v24, %v380_v29  ;;  %v341_v54 = vmul.f32 %v951_v43, %v340_v51 }
 0x3e0   :  { %v386_v40 = vmul.f32 %v965_v53, %v385_v35 }
 0x3e1   :  { %v345_v41 = vmul.f32 %v719_v22, %v344_v33 }
 0x3e2   :  { %v684_v46 = vpack.i.bf16 %v386_v40, %v371_v39  ;;  %v388_v48 = vpack.c.bf16 %v386_v40, %v371_v39 }
 0x3e3   :  { %v346_v49 = vadd.f32 %v719_v22, %v345_v41 }
 0x3e4   :  { %685 = vrot.lane.b32.xlu1 %v684_v46, %s879_s2  ;;  %403 = vrot.lane.b32.xlu2 %v388_v48, %s879_s2 }
 0x3e5   :  { %v350_v52 = vsel %vm349_vm2, %v719_v22, %v346_v49  ;;  %v270_v22 = vmax.f32 %v940_v32, 0.0 }
 0x3e6   :  { %v355_v53 = vsel %vm352_vm3, %v354_v50, %v350_v52 }
 0x3e7   :  { %v356_v55 = vmul.f32 %v956_v47, %v355_v53 }
 0x3e9   :  { %v387_v56 = vpack.c.bf16 %v356_v55, %v341_v54  ;;  %v689_v57 = vpack.i.bf16 %v356_v55, %v341_v54 }
 0x3eb   :  { %401 = vrot.lane.b32.xlu0 %v387_v56, %s879_s2 }
 0x3ec   :  { %690 = vrot.lane.b32.xlu2 %v689_v57, %s879_s2 }
 0x43e   :  { %v404_v58 = vpop.permute.xlu2 %403 }
 0x43f   :  { %419 = vmatpush.bf16.msrb.mxu0 %v404_v58 }
 0x446   :  { %v691_v2 = vpop.permute.xlu2 %690 }
 0x447   :  { %v692_v3 = vunpack.i.l.bf16 %v691_v2  ;;  %v693_v4 = vunpack.i.h.bf16 %v691_v2 }
 0x456   :  { %v686_v5 = vpop.permute.xlu1 %685 }
 0x457   :  { %v687_v6 = vunpack.i.l.bf16 %v686_v5  ;;  %v688_v7 = vunpack.i.h.bf16 %v686_v5 }
 0x45d   :  { %v402_v59 = vpop.permute.xlu0 %401 }
 0x45e   :  { %420 = vmatpush.bf16.msrb.mxu0 %v402_v59 }
 0x461   :  { %655 = vmatmul.msk.bf16.vlgmr.msrb.gmra.mxu0 %vm142_vm0, %v661_v60 }
 0x471   :  { %656 = vmatmul.msk.bf16.gmra.mxu0 %vm142_vm0, %v662_v61 }
 0x4de   :  { %v422_v62 = vpop.f32.mrf.mxu0 }
 0x4e6   :  { %v424_v43 = vpop.f32.mrf.mxu0 }
 0x4e7   :  { %v694_v63 = vpack.i.bf16 %v424_v43, %v422_v62 }
 0x4e9   :  { %695 = vrot.lane.b32.xlu0 %v694_v63, %s880_s4 }
 0x4ee   :  { %v427_v47 = vpop.f32.mrf.mxu0 }
 0x4f6   :  { %v429_v0 = vpop.f32.mrf.mxu0 }
 0x4f7   :  { %v699_v1 = vpack.i.bf16 %v429_v0, %v427_v47 }
 0x4f9   :  { %700 = vrot.lane.b32.xlu2 %v699_v1, %s880_s4 }
 0x50b   :  { %464 = vxpose.xlu0.b32.start [1/2] (short) (narrow) %v692_v3, 8 }
 0x513   :  { %465 = vxpose.xlu0.b32.end [2/2] (short) (narrow) %v693_v4, 8 }
 0x51f   :  { %530 = vxpose.xlu2.b32.start [1/2] (short) (narrow) %v687_v6, 8 }
 0x527   :  { %531 = vxpose.xlu2.b32.end [2/2] (short) (narrow) %v688_v7, 8 }
 0x553   :  { %v701_v8 = vpop.permute.xlu2 %700 }
 0x554   :  { %v703_v11 = vunpack.i.h.bf16 %v701_v8  ;;  %v702_v12 = vunpack.i.l.bf16 %v701_v8 }
 0x556   :  { %v450_v13 = vsel %vm142_vm0, %v271_v9, %v702_v12  ;;  %v451_v14 = vsel %vm142_vm0, %v272_v10, %v703_v11 }
 0x557   :  { %v454_v15 = vpack.c.bf16 %v450_v13, %v450_v13  ;;  %v455_v16 = vpack.c.bf16 %v451_v14, %v451_v14 }
 0x559   :  { %v565_v17 = vunpack.c.l.b16 %v454_v15  ;;  %v566_v18 = vunpack.c.l.b16 %v455_v16 }
 0x55b   :  { %v696_v19 = vpop.permute.xlu0 %695  ;;  %v567_v20 = vpack.c.b16 %v566_v18, %v565_v17 }
 0x55c   :  { %v698_v23 = vunpack.i.h.bf16 %v696_v19  ;;  %v697_v34 = vunpack.i.l.bf16 %v696_v19 }
 0x55d   :  { %579 = vmatpush.bf16.msrb.mxu2 %v567_v20 }
 0x55e   :  { %v448_v36 = vsel %vm142_vm0, %v269_v21, %v697_v34  ;;  %v449_v24 = vsel %vm142_vm0, %v270_v22, %v698_v23 }
 0x55f   :  { %v452_v25 = vpack.c.bf16 %v448_v36, %v448_v36  ;;  %v453_v26 = vpack.c.bf16 %v449_v24, %v449_v24 }
 0x561   :  { %v499_v27 = vunpack.c.l.b16 %v452_v25  ;;  %v500_v28 = vunpack.c.l.b16 %v453_v26 }
 0x563   :  { %v501_v29 = vpack.c.b16 %v500_v28, %v499_v27 }
 0x565   :  { %514 = vmatpush.bf16.msrb.mxu1 %v501_v29 }
 0x5af   :  { %v480_v31 = vpop.trf.xlu0 }
 0x5b0   :  { %v496_v33 = vpack.c.bf16 %v480_v31, %v480_v31 }
 0x5b2   :  { %657 = vmatmul.msk.bf16.vlgmr.msrb.gmra.mxu1 %vm503_vm4, %v496_v33 }
 0x5b8   :  { %v546_v30 = vpop.trf.xlu2 }
 0x5b9   :  { %v562_v35 = vpack.c.bf16 %v546_v30, %v546_v30 }
 0x5bb   :  { %658 = vmatmul.msk.bf16.vlgmr.msrb.gmra.mxu2 %vm503_vm4, %v562_v35 }
 0x62f   :  { %v516_v32 = vpop.f32.mrf.mxu1 }
 0x630   :  { %521 = vst.msk [vmem:[#allocation11] sm:$0xff] %vm520_vm5, %v516_v32 }
 0x637   :  { %v518_v37 = vpop.f32.mrf.mxu1 }
 0x63e   :  { %v581_v38 = vpop.f32.mrf.mxu2 }
 0x63f   :  { %585 = vst.msk [vmem:[#allocation11 + $0x8] sm:$0xff] %vm520_vm5, %v581_v38 }
 0x640   :  { %598 = dma.vmem_to_hbm [thread:$0]  %s591_s18, 256, %s593_s21, [#allocation4], %s882_s22, %s882_s22, %s883_s23  }
 0x646   :  { %v583_v39 = vpop.f32.mrf.mxu2 }
 0x647   :  { %870 = dma.done.wait [#allocation4], 256  }
 0x648   :  { %871 = vsyncadd [#allocation4], 4294967040 }
 0x649   :  { %603 = vsyncpa [#allocation3], 1 }
 0x64a   :  { %604 = vsyncpa [#allocation6], 1 }
 0x64b   :  { %605 = vsyncpa [#allocation9], 1 }
 0x64c   :  { %606 = vsyncpa [#allocation4], 1 }

</bundles_post_ra>
